<compile_context>
chip_gen: v6e
topology: v6e:2x2x1
jax: 0.10.0
libtpu: 0.0.40
codegen_flags: <defaults>
</compile_context>

<pallas_src>
from functools import partial

import jax
import jax.numpy as jnp
from jax.experimental import pallas as pl
from jax.experimental.pallas import tpu as pltpu


def _round_up(n, m):
    return ((n + m - 1) // m) * m


def _softplus(x):
    # Numerically-stable softplus, matches F.softplus (beta=1). Done in f32.
    return jnp.maximum(x, 0.0) + jnp.log1p(jnp.exp(-jnp.abs(x)))


def generative_net_kernel(
    xin_ref,                 # (tb, IN_Wp) bf16 packed input: [z || y || 0-pad]
    w0_ref, b0_ref,          # (IN_Wp, N0) bf16, (1, N0) f32 : block-diag fused layer
    w2_ref, b2_ref,          # (N0, Hp)   bf16, (1, Hp) f32
    w3_ref, b3_ref,          # (Hp, OUT_Wp) bf16, (1, OUT_Wp) f32
    out_ref,                 # (tb, OUT_Wp) bf16 packed output: [mu || var || x_rec || 0-pad]
    *, z_dim,
):
    xin = xin_ref[...]

    # Fused first layer: one MXU push gives t0 = [y_mu || y_var_pre || h1_pre].
    t0 = jnp.dot(xin, w0_ref[...], preferred_element_type=jnp.float32) + b0_ref[...]

    # softplus only matters on the var lanes; applying it to the (discarded) h lanes is
    # wasted-but-free EUP work.
    lane0 = jax.lax.broadcasted_iota(jnp.int32, t0.shape, 1)
    yv = jnp.where(lane0 < z_dim, t0, _softplus(t0))     # [mu || softplus(var) || junk]

    # p(x|z): ReLU on the yz lanes is harmless -- their rows in w2 are zero.
    h = jnp.maximum(t0, 0.0).astype(jnp.bfloat16)
    h = jnp.dot(h, w2_ref[...], preferred_element_type=jnp.float32) + b2_ref[...]
    h = jnp.maximum(h, 0.0).astype(jnp.bfloat16)
    x3 = jnp.dot(h, w3_ref[...], preferred_element_type=jnp.float32) + b3_ref[...]
    # x3 lanes [0, 2*z_dim) are exactly zero (zero weight columns / bias); the real
    # x_rec sits in lanes [2*z_dim, 2*z_dim + x_dim).

    ow = out_ref.shape[-1]
    if yv.shape[-1] < ow:                                  # static (trace-time) fixup
        yv = jnp.pad(yv, ((0, 0), (0, ow - yv.shape[-1])))
    elif yv.shape[-1] > ow:
        yv = yv[:, :ow]

    lane_out = jax.lax.broadcasted_iota(jnp.int32, x3.shape, 1)
    # One unmasked, lane-dense store of the packed output slab.
    out_ref[...] = jnp.where(lane_out < 2 * z_dim, yv, x3).astype(out_ref.dtype)


def prepare_params(params):
    """One-time prep: transpose to (in,out), fuse heads + first layer into one
    block-diagonal weight, zero-pad, cast weights to bf16 (biases stay f32)."""
    f32 = lambda a: jnp.asarray(a, jnp.float32)
    w_mu, b_mu = f32(params["w_mu"]), f32(params["b_mu"])    # (z_dim, y_dim)
    w_var, b_var = f32(params["w_var"]), f32(params["b_var"])
    w1, b1 = f32(params["w1"]), f32(params["b1"])            # (H, z_dim)
    w2, b2 = f32(params["w2"]), f32(params["b2"])            # (H, H)
    w3, b3 = f32(params["w3"]), f32(params["b3"])            # (x_dim, H)

    z_dim, y_dim = w_mu.shape
    H = w1.shape[0]
    x_dim = w3.shape[0]

    Hp = max(_round_up(H, 8), 64)                 # 50 -> 64 (zero padding)
    IN_Wp = _round_up(z_dim + y_dim, 128)         # packed [z || y] input lane width
    N0 = 2 * z_dim + Hp                           # fused first-layer output width
    OUT_Wp = _round_up(2 * z_dim + x_dim, 128)    # packed output, multiple of 128 lanes

    # Block-diagonal fused first-layer weight:
    #   rows [0, z_dim)            (z lanes)  -> columns [2*z_dim, 2*z_dim+H)  : w1
    #   rows [z_dim, z_dim+y_dim)  (y lanes)  -> columns [0, z_dim)            : w_mu
    #                                            columns [z_dim, 2*z_dim)      : w_var
    w0 = jnp.zeros((IN_Wp, N0), jnp.float32)
    w0 = w0.at[z_dim:z_dim + y_dim, :z_dim].set(w_mu.T)
    w0 = w0.at[z_dim:z_dim + y_dim, z_dim:2 * z_dim].set(w_var.T)
    w0 = w0.at[:z_dim, 2 * z_dim:2 * z_dim + H].set(w1.T)
    b0 = jnp.zeros((1, N0), jnp.float32)
    b0 = b0.at[0, :z_dim].set(b_mu)
    b0 = b0.at[0, z_dim:2 * z_dim].set(b_var)
    b0 = b0.at[0, 2 * z_dim:2 * z_dim + H].set(b1)

    w2p = jnp.zeros((N0, Hp), jnp.float32).at[2 * z_dim:2 * z_dim + H, :H].set(w2.T)
    b2p = jnp.zeros((1, Hp), jnp.float32).at[0, :H].set(b2)

    w3p = jnp.zeros((Hp, OUT_Wp), jnp.float32).at[:H, 2 * z_dim:2 * z_dim + x_dim].set(w3.T)
    b3p = jnp.zeros((1, OUT_Wp), jnp.float32).at[0, 2 * z_dim:2 * z_dim + x_dim].set(b3)

    prepared = dict(
        w0=w0.astype(jnp.bfloat16), b0=b0,
        w2=w2p.astype(jnp.bfloat16), b2=b2p,
        w3=w3p.astype(jnp.bfloat16), b3=b3p,
    )
    dims = (int(z_dim), int(y_dim), int(x_dim))
    return prepared, dims


@partial(jax.jit, static_argnames=("dims", "tile_b"))
def generative_net_forward(z, y, prepared, dims, tile_b=1024):
    z = jnp.asarray(z, jnp.float32)
    y = jnp.asarray(y, jnp.float32)
    z_dim, y_dim, x_dim = dims

    B = z.shape[0]
    IN_Wp, N0 = prepared["w0"].shape
    Hp = prepared["w2"].shape[1]
    OUT_Wp = prepared["b3"].shape[1]

    # Batch tiling: big tiles (default up to 1024 rows), 8-aligned, but keep >= 2 grid
    # steps whenever the batch allows it so v7x can split the "parallel" axis over
    # both TensorCores.
    B8 = _round_up(B, 8)
    tb = max(8, min(tile_b, _round_up((B8 + 1) // 2, 8)))
    Bp = _round_up(B, tb)
    grid = (Bp // tb,)

    # Pack [z || y] into a single lane-dense bf16 slab (one input DMA per grid step,
    # no half-empty 32/16-lane tiles).
    xin = jnp.zeros((Bp, IN_Wp), jnp.bfloat16)
    xin = xin.at[:B, :z_dim].set(z.astype(jnp.bfloat16))
    xin = xin.at[:B, z_dim:z_dim + y_dim].set(y.astype(jnp.bfloat16))

    batch_in_spec = pl.BlockSpec((tb, IN_Wp), lambda i: (i, 0))
    const_spec = lambda arr: pl.BlockSpec(arr.shape, lambda i: (0, 0))  # VMEM-resident

    # Cost estimate (advisory).
    flops = 2 * Bp * (IN_Wp * N0 + N0 * Hp + Hp * OUT_Wp)
    transcendentals = 2 * Bp * N0                       # exp + log1p in softplus
    w_bytes = sum(int(v.size) * v.dtype.itemsize for v in prepared.values())
    bytes_accessed = 2 * Bp * (IN_Wp + OUT_Wp) + w_bytes

    # VMEM budget from actual tile sizes (double-buffered bf16 I/O + weights +
    # generous headroom for f32 intermediates), clamped under v7x's 64 MiB ceiling.
    io_bytes = 2 * (tb * IN_Wp * 2 + tb * OUT_Wp * 2)
    interm_bytes = 8 * tb * max(N0, OUT_Wp) * 4
    needed = io_bytes + 2 * w_bytes + interm_bytes
    vmem_limit = int(min(max(2 * needed, 16 * 1024 * 1024), 48 * 1024 * 1024))

    packed = pl.pallas_call(
        partial(generative_net_kernel, z_dim=z_dim),
        out_shape=jax.ShapeDtypeStruct((Bp, OUT_Wp), jnp.bfloat16),
        grid=grid,
        in_specs=[
            batch_in_spec,
            const_spec(prepared["w0"]), const_spec(prepared["b0"]),
            const_spec(prepared["w2"]), const_spec(prepared["b2"]),
            const_spec(prepared["w3"]), const_spec(prepared["b3"]),
        ],
        out_specs=pl.BlockSpec((tb, OUT_Wp), lambda i: (i, 0)),
        compiler_params=pltpu.CompilerParams(
            dimension_semantics=("parallel",),
            vmem_limit_bytes=vmem_limit,
        ),
        cost_estimate=pl.CostEstimate(
            flops=flops,
            transcendentals=transcendentals,
            bytes_accessed=bytes_accessed,
        ),
    )(
        xin,
        prepared["w0"], prepared["b0"],
        prepared["w2"], prepared["b2"],
        prepared["w3"], prepared["b3"],
    )

    packed = packed[:B].astype(jnp.float32)
    return {
        "y_mean": packed[:, :z_dim],
        "y_var": packed[:, z_dim:2 * z_dim],
        "x_rec": packed[:, 2 * z_dim:2 * z_dim + x_dim],
    }


def _init_params(key, x_dim, z_dim, y_dim, hidden=50):
    """Deterministic synthetic init (shapes follow the PyTorch module)."""
    ks = jax.random.split(key, 10)

    def lin(kw, kb, out_d, in_d):
        bound = 1.0 / jnp.sqrt(in_d)
        w = jax.random.uniform(kw, (out_d, in_d), jnp.float32, -bound, bound)
        b = jax.random.uniform(kb, (out_d,), jnp.float32, -bound, bound)
        return w, b

    w_mu, b_mu = lin(ks[0], ks[1], z_dim, y_dim)
    w_var, b_var = lin(ks[2], ks[3], z_dim, y_dim)
    w1, b1 = lin(ks[4], ks[5], hidden, z_dim)
    w2, b2 = lin(ks[6], ks[7], hidden, hidden)
    w3, b3 = lin(ks[8], ks[9], x_dim, hidden)
    return dict(
        w_mu=w_mu, b_mu=b_mu, w_var=w_var, b_var=b_var,
        w1=w1, b1=b1, w2=w2, b2=b2, w3=w3, b3=b3,
    )


def _reference_forward(z, y, p):
    y_mu = y @ p["w_mu"].T + p["b_mu"]
    y_var = jax.nn.softplus(y @ p["w_var"].T + p["b_var"])
    h = jnp.maximum(z @ p["w1"].T + p["b1"], 0.0)
    h = jnp.maximum(h @ p["w2"].T + p["b2"], 0.0)
    x_rec = h @ p["w3"].T + p["b3"]
    return {"y_mean": y_mu, "y_var": y_var, "x_rec": x_rec}


if __name__ == "__main__":
    x_dim, z_dim, y_dim = 64, 32, 16     # packed output width = 2*32 + 64 = 128 lanes

    key = jax.random.PRNGKey(0)
    kz, ky, kp = jax.random.split(key, 3)
    params = _init_params(kp, x_dim, z_dim, y_dim)
    prepared, dims = prepare_params(params)   # one-time: fuse/transpose/pad/bf16

    # Small single-step batch, then a non-multiple batch that exercises row padding
    # and a 2-step parallel grid (both TCs on v7x).
    for B in (8, 300):
        z = jax.random.normal(kz, (B, z_dim), jnp.float32)
        y = jax.random.normal(ky, (B, y_dim), jnp.float32)

        out = generative_net_forward(z, y, prepared, dims)
        jax.block_until_ready(out)

        ref = _reference_forward(z, y, params)
        for k in ("y_mean", "y_var", "x_rec"):
            assert out[k].shape == ref[k].shape, (k, out[k].shape, ref[k].shape)
            # bf16 activations/weights -> loosened tolerance vs the f32 reference.
            assert jnp.allclose(out[k], ref[k], atol=5e-2, rtol=5e-2), (B, k)

    print("KERNEL_OK")
</pallas_src>

<mosaic_0001>
module attributes {stable_mosaic.version = 11 : i64} {
  func.func @generative_net_kernel(%arg0: i32, %arg1: memref<8x128xbf16, #tpu.memory_space<vmem>>, %arg2: memref<128x128xbf16, #tpu.memory_space<vmem>>, %arg3: memref<1x128xf32, #tpu.memory_space<vmem>>, %arg4: memref<128x64xbf16, #tpu.memory_space<vmem>>, %arg5: memref<1x64xf32, #tpu.memory_space<vmem>>, %arg6: memref<64x128xbf16, #tpu.memory_space<vmem>>, %arg7: memref<1x128xf32, #tpu.memory_space<vmem>>, %arg8: memref<8x128xbf16, #tpu.memory_space<vmem>>) attributes {dimension_semantics = [#tpu.dimension_semantics<parallel>], iteration_bounds = array<i64: 1>, scalar_prefetch = 0 : i64, scratch_operands = 0 : i64, tpu.core_type = #tpu.core_type<tc>, window_params = [{transform_indices = @transform_0, window_bounds = array<i64: 8, 128>}, {pipeline_mode = #tpu.pipeline_mode<synchronous>, transform_indices = @transform_1, window_bounds = array<i64: 128, 128>}, {pipeline_mode = #tpu.pipeline_mode<synchronous>, transform_indices = @transform_2, window_bounds = array<i64: 1, 128>}, {pipeline_mode = #tpu.pipeline_mode<synchronous>, transform_indices = @transform_3, window_bounds = array<i64: 128, 64>}, {pipeline_mode = #tpu.pipeline_mode<synchronous>, transform_indices = @transform_4, window_bounds = array<i64: 1, 64>}, {pipeline_mode = #tpu.pipeline_mode<synchronous>, transform_indices = @transform_5, window_bounds = array<i64: 64, 128>}, {pipeline_mode = #tpu.pipeline_mode<synchronous>, transform_indices = @transform_6, window_bounds = array<i64: 1, 128>}, {transform_indices = @transform_7, window_bounds = array<i64: 8, 128>}]} {
    %c0 = arith.constant 0 : index
    %c0_0 = arith.constant 0 : index
    %0 = vector.load %arg1[%c0, %c0_0] : memref<8x128xbf16, #tpu.memory_space<vmem>>, vector<8x128xbf16>
    %c0_1 = arith.constant 0 : index
    %c0_2 = arith.constant 0 : index
    %1 = vector.load %arg2[%c0_1, %c0_2] : memref<128x128xbf16, #tpu.memory_space<vmem>>, vector<128x128xbf16>
    %cst = arith.constant dense<0.000000e+00> : vector<8x128xf32>
    %2 = tpu.matmul %0, %1, %cst {dimension_numbers = #tpu.dot_dimension_numbers<[1], [0], [0], [1], [0, 0, 1, 1], [], []>} : vector<8x128xbf16>, vector<128x128xbf16>, vector<8x128xf32> -> vector<8x128xf32>
    %c0_3 = arith.constant 0 : index
    %c0_4 = arith.constant 0 : index
    %3 = vector.load %arg3[%c0_3, %c0_4] : memref<1x128xf32, #tpu.memory_space<vmem>>, vector<1x128xf32>
    %4 = vector.broadcast %3 : vector<1x128xf32> to vector<8x128xf32>
    %5 = arith.addf %2, %4 : vector<8x128xf32>
    %6 = tpu.iota {dimensions = array<i32: 1>} : vector<8x128xi32>
    %c32_i32 = arith.constant 32 : i32
    %7 = vector.broadcast %c32_i32 : i32 to vector<8x128xi32>
    %8 = arith.cmpi slt, %6, %7 : vector<8x128xi32>
    %cst_5 = arith.constant 0.000000e+00 : f32
    %9 = vector.broadcast %cst_5 : f32 to vector<8x128xf32>
    %10 = arith.maximumf %5, %9 : vector<8x128xf32>
    %11 = math.absf %5 : vector<8x128xf32>
    %cst_6 = arith.constant 0.000000e+00 : f32
    %12 = vector.broadcast %cst_6 : f32 to vector<8x128xf32>
    %13 = arith.subf %12, %11 : vector<8x128xf32>
    %14 = math.exp %13 : vector<8x128xf32>
    %15 = math.log1p %14 : vector<8x128xf32>
    %16 = arith.addf %10, %15 : vector<8x128xf32>
    %17 = arith.select %8, %5, %16 : vector<8x128xi1>, vector<8x128xf32>
    %cst_7 = arith.constant 0.000000e+00 : f32
    %18 = vector.broadcast %cst_7 : f32 to vector<8x128xf32>
    %19 = arith.maximumf %5, %18 : vector<8x128xf32>
    %20 = arith.truncf %19 : vector<8x128xf32> to vector<8x128xbf16>
    %c0_8 = arith.constant 0 : index
    %c0_9 = arith.constant 0 : index
    %21 = vector.load %arg4[%c0_8, %c0_9] : memref<128x64xbf16, #tpu.memory_space<vmem>>, vector<128x64xbf16>
    %cst_10 = arith.constant dense<0.000000e+00> : vector<8x64xf32>
    %22 = tpu.matmul %20, %21, %cst_10 {dimension_numbers = #tpu.dot_dimension_numbers<[1], [0], [0], [1], [0, 0, 1, 1], [], []>} : vector<8x128xbf16>, vector<128x64xbf16>, vector<8x64xf32> -> vector<8x64xf32>
    %c0_11 = arith.constant 0 : index
    %c0_12 = arith.constant 0 : index
    %23 = vector.load %arg5[%c0_11, %c0_12] : memref<1x64xf32, #tpu.memory_space<vmem>>, vector<1x64xf32>
    %24 = vector.broadcast %23 : vector<1x64xf32> to vector<8x64xf32>
    %25 = arith.addf %22, %24 : vector<8x64xf32>
    %cst_13 = arith.constant 0.000000e+00 : f32
    %26 = vector.broadcast %cst_13 : f32 to vector<8x64xf32>
    %27 = arith.maximumf %25, %26 : vector<8x64xf32>
    %28 = arith.truncf %27 : vector<8x64xf32> to vector<8x64xbf16>
    %c0_14 = arith.constant 0 : index
    %c0_15 = arith.constant 0 : index
    %29 = vector.load %arg6[%c0_14, %c0_15] : memref<64x128xbf16, #tpu.memory_space<vmem>>, vector<64x128xbf16>
    %cst_16 = arith.constant dense<0.000000e+00> : vector<8x128xf32>
    %30 = tpu.matmul %28, %29, %cst_16 {dimension_numbers = #tpu.dot_dimension_numbers<[1], [0], [0], [1], [0, 0, 1, 1], [], []>} : vector<8x64xbf16>, vector<64x128xbf16>, vector<8x128xf32> -> vector<8x128xf32>
    %c0_17 = arith.constant 0 : index
    %c0_18 = arith.constant 0 : index
    %31 = vector.load %arg7[%c0_17, %c0_18] : memref<1x128xf32, #tpu.memory_space<vmem>>, vector<1x128xf32>
    %32 = vector.broadcast %31 : vector<1x128xf32> to vector<8x128xf32>
    %33 = arith.addf %30, %32 : vector<8x128xf32>
    %34 = tpu.iota {dimensions = array<i32: 1>} : vector<8x128xi32>
    %c64_i32 = arith.constant 64 : i32
    %35 = vector.broadcast %c64_i32 : i32 to vector<8x128xi32>
    %36 = arith.cmpi slt, %34, %35 : vector<8x128xi32>
    %37 = arith.select %36, %17, %33 : vector<8x128xi1>, vector<8x128xf32>
    %38 = arith.truncf %37 : vector<8x128xf32> to vector<8x128xbf16>
    %c0_19 = arith.constant 0 : index
    %c0_20 = arith.constant 0 : index
    %39 = vector.load %arg8[%c0_19, %c0_20] : memref<8x128xbf16, #tpu.memory_space<vmem>>, vector<8x128xbf16>
    tpu.vector_store %arg8[%c0_19, %c0_20], %38 {strides = array<i32>} : memref<8x128xbf16, #tpu.memory_space<vmem>>, vector<8x128xbf16>,
    return
  }
  func.func @transform_0(%arg0: i32) -> (i32, i32) {
    %c0_i32 = arith.constant 0 : i32
    %c0_i32_0 = arith.constant 0 : i32
    return %arg0, %c0_i32 : i32, i32
  }
  func.func @transform_1(%arg0: i32) -> (i32, i32) {
    %c0_i32 = arith.constant 0 : i32
    %c0_i32_0 = arith.constant 0 : i32
    %c0_i32_1 = arith.constant 0 : i32
    return %c0_i32, %c0_i32_0 : i32, i32
  }
  func.func @transform_2(%arg0: i32) -> (i32, i32) {
    %c0_i32 = arith.constant 0 : i32
    %c0_i32_0 = arith.constant 0 : i32
    %c0_i32_1 = arith.constant 0 : i32
    return %c0_i32, %c0_i32_0 : i32, i32
  }
  func.func @transform_3(%arg0: i32) -> (i32, i32) {
    %c0_i32 = arith.constant 0 : i32
    %c0_i32_0 = arith.constant 0 : i32
    %c0_i32_1 = arith.constant 0 : i32
    return %c0_i32, %c0_i32_0 : i32, i32
  }
  func.func @transform_4(%arg0: i32) -> (i32, i32) {
    %c0_i32 = arith.constant 0 : i32
    %c0_i32_0 = arith.constant 0 : i32
    %c0_i32_1 = arith.constant 0 : i32
    return %c0_i32, %c0_i32_0 : i32, i32
  }
  func.func @transform_5(%arg0: i32) -> (i32, i32) {
    %c0_i32 = arith.constant 0 : i32
    %c0_i32_0 = arith.constant 0 : i32
    %c0_i32_1 = arith.constant 0 : i32
    return %c0_i32, %c0_i32_0 : i32, i32
  }
  func.func @transform_6(%arg0: i32) -> (i32, i32) {
    %c0_i32 = arith.constant 0 : i32
    %c0_i32_0 = arith.constant 0 : i32
    %c0_i32_1 = arith.constant 0 : i32
    return %c0_i32, %c0_i32_0 : i32, i32
  }
  func.func @transform_7(%arg0: i32) -> (i32, i32) {
    %c0_i32 = arith.constant 0 : i32
    %c0_i32_0 = arith.constant 0 : i32
    return %arg0, %c0_i32 : i32, i32
  }
}

</mosaic_0001>

<bundles_post_ra>
// kernel: generative_net_forward.1
= control target key start
LH: loop header
LB: loop body
LE: loop exit
PB: predicated region body
PF: predicated region fallthrough
CT: control target
= control target key end

     0   :  { %v488_v0 = vmov 0.0   ;;  %vm489_vm0 = vmmov 0   ;;  %v139_v34 = vlaneseq  ;;  %vm311_vm3 = vcmask 523264   ;;  %s631_s1 = inlined_call_operand.vmem [shape: bf16[128,128], index: 1, kind: input, shape index: {}]   ;;  %s632_s3 = inlined_call_operand.vmem [shape: bf16[128,64], index: 3, kind: input, shape index: {}]   ;;  %s633_s0 = inlined_call_operand.vmem [shape: bf16[8,128], index: 0, kind: input, shape index: {}]   ;;  %s634_s5 = inlined_call_operand.vmem [shape: bf16[64,128], index: 5, kind: input, shape index: {}]   ;;  %s635_s2 = inlined_call_operand.vmem [shape: f32[1,128], index: 2, kind: input, shape index: {}]   ;;  %s636_s4 = inlined_call_operand.vmem [shape: f32[1,64], index: 4, kind: input, shape index: {}]   ;;  %s637_s6 = inlined_call_operand.vmem [shape: f32[1,128], index: 6, kind: input, shape index: {}]   ;;  %s638_s7 = inlined_call_operand.vmem [shape: bf16[8,128], index: 7, kind: output, shape index: {}]  }
   0x1   :  { %410 = vmatprep.subr.bf16.mxu0 %v488_v0  ;;  %v464_v1 = vld [vmem:[%s631_s1 + $0x38] sm:$0xff]   ;;  %426 = vmatprep.mubr.msk.bf16.mxu0 %vm489_vm0, %v488_v0  ;;  %v465_v2 = vld [vmem:[%s631_s1 + $0x30] sm:$0xff]   ;;  %v466_v3 = vld [vmem:[%s631_s1 + $0x28] sm:$0xff]  }
   0x2   :  { %430 = vmatprep.subr.bf16.mxu1 %v488_v0  ;;  %446 = vmatprep.mubr.msk.bf16.mxu1 %vm489_vm0, %v488_v0  ;;  %v472_v4 = vld [vmem:[%s632_s3 + $0x38] sm:$0xff]   ;;  %v467_v5 = vld [vmem:[%s631_s1 + $0x20] sm:$0xff]   ;;  %v473_v6 = vld [vmem:[%s632_s3 + $0x30] sm:$0xff]   ;;  %v140_v37 = vand.u32 127, %v139_v34 }
   0x3   :  { %411 = vmatpush3.bf16.msra.mxu0 %v464_v1  ;;  %431 = vmatpush3.bf16.msra.mxu1 %v472_v4  ;;  %v468_v7 = vld [vmem:[%s631_s1 + $0x18] sm:$0xff]   ;;  %v474_v8 = vld [vmem:[%s632_s3 + $0x28] sm:$0xff]   ;;  %v469_v9 = vld [vmem:[%s631_s1 + $0x10] sm:$0xff]  }
   0x4   :  { %412 = vmatprep.subr.bf16.mxu0 %v488_v0  ;;  %432 = vmatprep.subr.bf16.mxu1 %v488_v0  ;;  %v475_v10 = vld [vmem:[%s632_s3 + $0x20] sm:$0xff]   ;;  %v470_v11 = vld [vmem:[%s631_s1 + $0x8] sm:$0xff]   ;;  %v476_v12 = vld [vmem:[%s632_s3 + $0x18] sm:$0xff]   ;;  %vm141_vm2 = vcmp.lt.s32.totalorder %v140_v37, 32  ;;  %vm355_vm4 = vcmp.lt.s32.totalorder %v140_v37, 64 }
   0x5   :  { %v471_v13 = vld [vmem:[%s631_s1] sm:$0xff]   ;;  %v477_v14 = vld [vmem:[%s632_s3 + $0x10] sm:$0xff]   ;;  %v478_v16 = vld [vmem:[%s632_s3 + $0x8] sm:$0xff]  }
   0x6   :  { %v27_v15 = vld [vmem:[%s633_s0] sm:$0xf]  ;;  %v480_v18 = vld [vmem:[%s634_s5 + $0x18] sm:$0xff]   ;;  %v481_v19 = vld [vmem:[%s634_s5 + $0x10] sm:$0xff]  }
   0x7   :  { %413 = vmatpush3.bf16.msra.mxu0 %v465_v2  ;;  %433 = vmatpush3.bf16.msra.mxu1 %v473_v6  ;;  %v479_v17 = vld [vmem:[%s632_s3] sm:$0xff]   ;;  %v482_v44 = vld [vmem:[%s634_s5 + $0x8] sm:$0xff]  }
   0x8   :  { %414 = vmatprep.subr.bf16.mxu0 %v488_v0  ;;  %434 = vmatprep.subr.bf16.mxu1 %v488_v0  ;;  %v363_v20 = vld [vmem:[%s635_s2] ss:$0 sm:$0xff] }
   0x9   :  { %v483_v45 = vld [vmem:[%s634_s5] sm:$0xff]  }
   0xa   :  { %v372_v46 = vld [vmem:[%s636_s4] ss:$0 sm:$0xff] }
   0xb   :  { %415 = vmatpush3.bf16.msra.mxu0 %v466_v3  ;;  %435 = vmatpush3.bf16.msra.mxu1 %v474_v8  ;;  %v381_v54 = vld [vmem:[%s637_s6] ss:$0 sm:$0xff] }
   0xc   :  { %416 = vmatprep.subr.bf16.mxu0 %v488_v0  ;;  %436 = vmatprep.subr.bf16.mxu1 %v488_v0 }
   0xf   :  { %417 = vmatpush3.bf16.msra.mxu0 %v467_v5  ;;  %437 = vmatpush3.bf16.msra.mxu1 %v475_v10 }
  0x10   :  { %418 = vmatprep.subr.bf16.mxu0 %v488_v0  ;;  %438 = vmatprep.subr.bf16.mxu1 %v488_v0 }
  0x13   :  { %419 = vmatpush3.bf16.msra.mxu0 %v468_v7  ;;  %439 = vmatpush3.bf16.msra.mxu1 %v476_v12 }
  0x14   :  { %420 = vmatprep.subr.bf16.mxu0 %v488_v0  ;;  %440 = vmatprep.subr.bf16.mxu1 %v488_v0 }
  0x17   :  { %421 = vmatpush3.bf16.msra.mxu0 %v469_v9  ;;  %441 = vmatpush3.bf16.msra.mxu1 %v477_v14 }
  0x18   :  { %422 = vmatprep.subr.bf16.mxu0 %v488_v0  ;;  %442 = vmatprep.subr.bf16.mxu1 %v488_v0 }
  0x1b   :  { %423 = vmatpush3.bf16.msra.mxu0 %v470_v11  ;;  %443 = vmatpush3.bf16.msra.mxu1 %v478_v16 }
  0x1c   :  { %424 = vmatprep.subr.bf16.mxu0 %v488_v0  ;;  %444 = vmatprep.subr.bf16.mxu1 %v488_v0 }
  0x1f   :  { %425 = vmatpush3.bf16.msra.mxu0 %v471_v13  ;;  %445 = vmatpush3.bf16.msra.mxu1 %v479_v17 }
  0x20   :  { %450 = vmatprep.subr.bf16.mxu0 %v488_v0 }
  0x22   :  { %427 = vmatmul.mubr.bf16.vlgmr.msra.gmra.mxu0 %v27_v15 }
  0x23   :  { %458 = vmatprep.mubr.msk.bf16.mxu0 %vm489_vm0, %v488_v0  ;;  %451 = vmatpush3.bf16.msra.mxu0 %v480_v18 }
  0x24   :  { %452 = vmatprep.subr.bf16.mxu0 %v488_v0 }
  0x27   :  { %453 = vmatpush3.bf16.msra.mxu0 %v481_v19 }
  0x28   :  { %454 = vmatprep.subr.bf16.mxu0 %v488_v0 }
  0x2b   :  { %455 = vmatpush3.bf16.msra.mxu0 %v482_v44 }
  0x2c   :  { %456 = vmatprep.subr.bf16.mxu0 %v488_v0 }
  0x2f   :  { %457 = vmatpush3.bf16.msra.mxu0 %v483_v45 }
  0xe2   :  { %v133_v21 = vpop.f32.mrf.mxu0 }
  0xe3   :  { %v134_v22 = vadd.f32 %v363_v20, %v133_v21 }
  0xe4   :  { %v428_v23 = vpop.f32.mrf.mxu0 }
  0xe5   :  { %v142_v24 = vmax.f32 %v134_v22, 0.0  ;;  %v143_v25 = vand.u32 2147483647, %v134_v22 }
  0xe6   :  { %v136_v26 = vpop.f32.mrf.mxu0 }
  0xe7   :  { %v144_v27 = vsub.f32 0.0, %v143_v25  ;;  %v158_v28 = vpack.c.bf16 %v142_v24, %v142_v24 }
  0xe8   :  { %v429_v29 = vpop.f32.mrf.mxu0 }
  0xe9   :  { %v145_v30 = vmul.f32 1.442695, %v144_v27  ;;  %447 = vmatmul.mubr.bf16.vlgmr.msra.gmra.mxu1 %v158_v28 }
  0xeb   :  { %484 = vpow2.f32 %v145_v30 }
  0xf8   :  { %v485_v31 = vpop.eup %484 }
  0xf9   :  { %v147_v32 = vadd.f32 1.0, %v485_v31  ;;  %v150_v33 = vmul.f32 -0.5, %v485_v31  ;;  %v153_v36 = vand.u32 2147483647, %v485_v31 }
  0xfb   :  { %486 = vlog2.f32 %v147_v32  ;;  %v151_v35 = vadd.f32 1.0, %v150_v33  ;;  %vm154_vm1 = vcmp.lt.f32.partialorder %v153_v36, 0.0004427343 }
  0xfd   :  { %v152_v40 = vmul.f32 %v485_v31, %v151_v35 }
 0x108   :  { %v487_v38 = vpop.eup %486 }
 0x109   :  { %v149_v39 = vmul.f32 0.6931472, %v487_v38 }
 0x10b   :  { %v155_v41 = vsel %vm154_vm1, %v152_v40, %v149_v39 }
 0x10c   :  { %v156_v42 = vadd.f32 %v155_v41, %v142_v24 }
 0x10e   :  { %v157_v43 = vsel %vm141_vm2, %v134_v22, %v156_v42 }
 0x1a9   :  { %v264_v47 = vpop.f32.mrf.mxu1 }
 0x1aa   :  { %v265_v48 = vadd.f32 %v372_v46, %v264_v47 }
 0x1ab   :  { %v448_v49 = vpop.f32.mrf.mxu1 }
 0x1ac   :  { %v270_v50 = vmax.f32 %v265_v48, 0.0 }
 0x1ad   :  { %v267_v51 = vpop.f32.mrf.mxu1 }
 0x1ae   :  { %v271_v52 = vpack.c.bf16 %v270_v50, %v270_v50 }
 0x1af   :  { %v449_v53 = vpop.f32.mrf.mxu1 }
 0x1b0   :  { %459 = vmatmul.mubr.msk.bf16.vlgmr.msra.gmra.mxu0 %vm311_vm3, %v271_v52 }
 0x270   :  { %v349_v55 = vpop.f32.mrf.mxu0 }
 0x271   :  { %v350_v56 = vadd.f32 %v381_v54, %v349_v55 }
 0x272   :  { %v460_v57 = vpop.f32.mrf.mxu0 }
 0x273   :  { %v356_v58 = vsel %vm355_vm4, %v157_v43, %v350_v56 }
 0x274   :  { %v357_v59 = vpack.c.bf16 %v356_v58, %v356_v58  ;;  %v352_v60 = vpop.f32.mrf.mxu0 }
 0x276   :  { %358 = vst [vmem:[%s638_s7] sm:$0xf] %v357_v59  ;;  %v461_v61 = vpop.f32.mrf.mxu0 }

</bundles_post_ra>
